<compile_context>
chip_gen: v7x
topology: tpu7x:2x2x1
jax: 0.10.0
libtpu: 0.0.40
codegen_flags: <defaults>
</compile_context>

<pallas_src>
import functools

import jax
import jax.numpy as jnp
from jax.experimental import pallas as pl
from jax.experimental.pallas import tpu as pltpu


_LANES = 128
_SUBLANES = 8
_GRANULE = _SUBLANES * _LANES        # 1024 cells: smallest tile increment
_TARGET_CELLS = 16384                # cells per grid step (>= v5e/v6e/v7x minimums)

_ROWS_PER_EDGE = 7                   # [u, v, p*(rhs/rho), fDx, fDy, nx*area, ny*area]
_IN_ROWS = 3 * _ROWS_PER_EDGE        # 21 packed input rows
_OUT_ROWS = 3                        # [momentum_x, momentum_y, continuity]


def _cdiv(a, b):
    return -(-a // b)


def _tiling(num_cells):
    """Tile derivation: even grid of >=2 steps, 1024-cell padding granularity."""
    n_g = max(1, _cdiv(num_cells, _GRANULE))        # granules of real work
    tgt_g = _TARGET_CELLS // _GRANULE               # granules per step target (16)
    n_steps = max(2, 2 * _cdiv(n_g, 2 * tgt_g))     # even, >= 2 (v7x dual-TC)
    g_per_step = _cdiv(n_g, n_steps)                # <= tgt_g by construction
    tile_lanes = g_per_step * _LANES                # lanes per grid step
    cells_padded = n_steps * g_per_step * _GRANULE  # total padded cells
    return n_steps, tile_lanes, cells_padded


def _intergrator_kernel(packed_ref, coef_ref, out_ref):
    # packed_ref: (21, 8, TL) f32  3 edges x [u, v, p*(rhs/rho), fDx, fDy, nx*A, ny*A]
    # coef_ref:   (1,)  f32 SMEM   [-rhs_coef]
    # out_ref:    (3, 8, TL) f32   [momentum_x, momentum_y, continuity]
    neg_rhs = coef_ref[0]
    tl = out_ref.shape[-1]
    n_strips = tl // _LANES          # static Python int

    # Strip-mine over 128-lane (1024-cell) sub-blocks: every operand is a fully
    # dense (8, 128) vreg and nothing accumulates across the whole tile, so the
    # live set never approaches the 64-vreg file (no spills at any tile size).
    for j in range(n_strips):
        sl = slice(j * _LANES, (j + 1) * _LANES)
        mx = my = ct = None
        for e in range(3):           # static unrolled loop over the cell's 3 edges
            b = _ROWS_PER_EDGE * e
            u = packed_ref[b + 0, :, sl]
            v = packed_ref[b + 1, :, sl]
            ps = packed_ref[b + 2, :, sl]       # p * rhs/rho (pre-folded)
            fdx = packed_ref[b + 3, :, sl]
            fdy = packed_ref[b + 4, :, sl]
            nax = packed_ref[b + 5, :, sl]      # nx * area (pre-folded)
            nay = packed_ref[b + 6, :, sl]

            ct_e = u * nax + v * nay            # (uv . n) * area  (continuity inc)
            s = neg_rhs * ct_e                  # shared conserved-convection factor
            mx_e = u * s + fdx - ps * nax
            my_e = v * s + fdy - ps * nay
            if mx is None:
                mx, my, ct = mx_e, my_e, ct_e
            else:
                mx, my, ct = mx + mx_e, my + my_e, ct + ct_e

        # One dense (3, 8, 128) store per strip — single unmasked vst stream.
        out_ref[:, :, sl] = jnp.stack([mx, my, ct], axis=0)


@functools.partial(jax.jit, static_argnames=("loss_cont",))
def intergrator_forward(uv_face, p_face, flux_D, unv, rho, rhs_coef,
                        face_area, cell_face, loss_cont=1):
    """JAX/Pallas equivalent of Intergrator.forward.

    uv_face:   (F, 2) float32
    p_face:    (F, 1) float32
    flux_D:    (F, 2) float32
    unv:       (C, 3, 2) float32
    rho, rhs_coef: scalars
    face_area: (F, 1) float32
    cell_face: (3, C) int32
    Returns (loss_continuity, momentum_rhs) matching the torch module.
    """
    C = cell_face.shape[1]
    n_steps, tile_lanes, Cp = _tiling(C)
    lanes_total = Cp // _SUBLANES
    pad = Cp - C

    f32 = jnp.float32
    rhs_f = jnp.asarray(rhs_coef, f32)
    rho_f = jnp.asarray(rho, f32)

    # --- lean XLA-side packing: one fused gather, pad only the tiny arrays ---
    cf = jnp.pad(cell_face.astype(jnp.int32), ((0, 0), (0, pad)))         # (3, Cp)
    unv_p = jnp.pad(unv.astype(f32), ((0, pad), (0, 0), (0, 0)))          # (Cp, 3, 2)

    # Per-face table: [u, v, p*(rhs/rho), fDx, fDy, area]
    face_feat = jnp.concatenate(
        [uv_face.astype(f32),
         p_face.astype(f32) * (rhs_f / rho_f),
         flux_D.astype(f32),
         face_area.astype(f32)], axis=-1)                                  # (F, 6)
    g = jnp.take(face_feat, cf.reshape(-1), axis=0).reshape(3, Cp, 6)      # one gather
    nA = jnp.transpose(unv_p, (1, 0, 2)) * g[..., 5:6]                     # (3, Cp, 2)
    edge = jnp.concatenate([g[..., :5], nA], axis=-1)                      # (3, Cp, 7)
    packed = jnp.transpose(edge, (0, 2, 1)).reshape(
        _IN_ROWS, _SUBLANES, lanes_total)                                  # (21, 8, L)

    coef = jnp.reshape(-rhs_f, (1,))                                       # SMEM scalar

    out = pl.pallas_call(
        _intergrator_kernel,
        out_shape=jax.ShapeDtypeStruct((_OUT_ROWS, _SUBLANES, lanes_total), f32),
        grid=(n_steps,),
        in_specs=[
            pl.BlockSpec((_IN_ROWS, _SUBLANES, tile_lanes),
                         lambda i: (0, 0, i)),
            pl.BlockSpec(memory_space=pltpu.MemorySpace.SMEM),
        ],
        out_specs=pl.BlockSpec((_OUT_ROWS, _SUBLANES, tile_lanes),
                               lambda i: (0, 0, i)),
        compiler_params=pltpu.CompilerParams(
            dimension_semantics=("parallel",)),
    )(packed, coef)

    flat = out.reshape(_OUT_ROWS, Cp)
    momentum = jnp.transpose(flat[0:2, :C])                                # (C, 2)
    if loss_cont > 0:
        loss_continuity = jnp.transpose(flat[2:3, :C])                     # (C, 1)
    else:
        loss_continuity = 0.0
    return loss_continuity, momentum


def _reference(uv_face, p_face, flux_D, unv, rho, rhs_coef, face_area,
               cell_face):
    """Pure-JAX replication of the torch forward (for verification)."""
    def cdot(a, b):
        return jnp.sum(a * b, axis=-1, keepdims=True)

    def cflux(a, b):
        return jnp.concatenate([cdot(a[:, 0:2], b), cdot(a[:, 2:4], b)],
                               axis=-1)

    e0 = face_area[cell_face[0]]
    e1 = face_area[cell_face[1]]
    e2 = face_area[cell_face[2]]
    uu_vu = jnp.concatenate([uv_face[:, 0:1] * uv_face,
                             uv_face[:, 1:2] * uv_face], axis=-1)
    cont = (cdot(uv_face[cell_face[0]], unv[:, 0, :]) * e0 +
            cdot(uv_face[cell_face[1]], unv[:, 1, :]) * e1 +
            cdot(uv_face[cell_face[2]], unv[:, 2, :]) * e2)
    fA = (cflux(uu_vu[cell_face[0]], unv[:, 0, :]) * e0 +
          cflux(uu_vu[cell_face[1]], unv[:, 1, :]) * e1 +
          cflux(uu_vu[cell_face[2]], unv[:, 2, :]) * e2)
    fD = (flux_D[cell_face[0]] + flux_D[cell_face[1]] + flux_D[cell_face[2]])
    fP = (p_face[cell_face[0]] * unv[:, 0, :] * e0 +
          p_face[cell_face[1]] * unv[:, 1, :] * e1 +
          p_face[cell_face[2]] * unv[:, 2, :] * e2)
    return cont, rhs_coef * (-fA - 1.0 / rho * fP) + fD


if __name__ == "__main__":
    key = jax.random.PRNGKey(0)
    kf = jax.random.split(key, 6)

    F = 7500   # number of faces
    C = 5000   # number of cells -> grid of 2 steps, 3 x 1024-cell strips each

    uv_face = jax.random.normal(kf[0], (F, 2), jnp.float32)
    p_face = jax.random.normal(kf[1], (F, 1), jnp.float32)
    flux_D = jax.random.normal(kf[2], (F, 2), jnp.float32)
    unv = jax.random.normal(kf[3], (C, 3, 2), jnp.float32)
    face_area = jax.random.uniform(kf[4], (F, 1), jnp.float32, 0.1, 1.0)
    cell_face = jax.random.randint(kf[5], (3, C), 0, F, jnp.int32)
    rho = 1.2
    rhs_coef = 0.5

    loss_cont, momentum = intergrator_forward(
        uv_face, p_face, flux_D, unv, rho, rhs_coef, face_area, cell_face,
        loss_cont=1)
    jax.block_until_ready(momentum)
    jax.block_until_ready(loss_cont)

    cont_ref, mom_ref = _reference(uv_face, p_face, flux_D, unv, rho,
                                   rhs_coef, face_area, cell_face)
    assert momentum.shape == (C, 2) and loss_cont.shape == (C, 1)
    assert jnp.allclose(momentum, mom_ref, rtol=1e-4, atol=1e-4)
    assert jnp.allclose(loss_cont, cont_ref, rtol=1e-4, atol=1e-4)

    print("KERNEL_OK")
</pallas_src>

<mosaic_0001>
module attributes {stable_mosaic.version = 11 : i64} {
  func.func @_intergrator_kernel(%arg0: i32, %arg1: memref<21x8x384xf32, #tpu.memory_space<vmem>>, %arg2: memref<1xf32, #tpu.memory_space<smem>>, %arg3: memref<3x8x384xf32, #tpu.memory_space<vmem>>) attributes {dimension_semantics = [#tpu.dimension_semantics<parallel>], iteration_bounds = array<i64: 2>, scalar_prefetch = 0 : i64, scratch_operands = 0 : i64, tpu.core_type = #tpu.core_type<tc>, window_params = [{transform_indices = @transform_0, window_bounds = array<i64: 21, 8, 384>}, {transform_indices = @transform_1, window_bounds = array<i64: 1>}, {transform_indices = @transform_2, window_bounds = array<i64: 3, 8, 384>}]} {
    %c0 = arith.constant 0 : index
    %0 = memref.load %arg2[%c0] : memref<1xf32, #tpu.memory_space<smem>>
    %c0_0 = arith.constant 0 : index
    %c0_1 = arith.constant 0 : index
    %c0_2 = arith.constant 0 : index
    %1 = vector.load %arg1[%c0_0, %c0_1, %c0_2] : memref<21x8x384xf32, #tpu.memory_space<vmem>>, vector<1x8x128xf32>
    %2 = vector.shape_cast %1 : vector<1x8x128xf32> to vector<8x128xf32>
    %c1 = arith.constant 1 : index
    %c0_3 = arith.constant 0 : index
    %c0_4 = arith.constant 0 : index
    %3 = vector.load %arg1[%c1, %c0_3, %c0_4] : memref<21x8x384xf32, #tpu.memory_space<vmem>>, vector<1x8x128xf32>
    %4 = vector.shape_cast %3 : vector<1x8x128xf32> to vector<8x128xf32>
    %c2 = arith.constant 2 : index
    %c0_5 = arith.constant 0 : index
    %c0_6 = arith.constant 0 : index
    %5 = vector.load %arg1[%c2, %c0_5, %c0_6] : memref<21x8x384xf32, #tpu.memory_space<vmem>>, vector<1x8x128xf32>
    %6 = vector.shape_cast %5 : vector<1x8x128xf32> to vector<8x128xf32>
    %c3 = arith.constant 3 : index
    %c0_7 = arith.constant 0 : index
    %c0_8 = arith.constant 0 : index
    %7 = vector.load %arg1[%c3, %c0_7, %c0_8] : memref<21x8x384xf32, #tpu.memory_space<vmem>>, vector<1x8x128xf32>
    %8 = vector.shape_cast %7 : vector<1x8x128xf32> to vector<8x128xf32>
    %c4 = arith.constant 4 : index
    %c0_9 = arith.constant 0 : index
    %c0_10 = arith.constant 0 : index
    %9 = vector.load %arg1[%c4, %c0_9, %c0_10] : memref<21x8x384xf32, #tpu.memory_space<vmem>>, vector<1x8x128xf32>
    %10 = vector.shape_cast %9 : vector<1x8x128xf32> to vector<8x128xf32>
    %c5 = arith.constant 5 : index
    %c0_11 = arith.constant 0 : index
    %c0_12 = arith.constant 0 : index
    %11 = vector.load %arg1[%c5, %c0_11, %c0_12] : memref<21x8x384xf32, #tpu.memory_space<vmem>>, vector<1x8x128xf32>
    %12 = vector.shape_cast %11 : vector<1x8x128xf32> to vector<8x128xf32>
    %c6 = arith.constant 6 : index
    %c0_13 = arith.constant 0 : index
    %c0_14 = arith.constant 0 : index
    %13 = vector.load %arg1[%c6, %c0_13, %c0_14] : memref<21x8x384xf32, #tpu.memory_space<vmem>>, vector<1x8x128xf32>
    %14 = vector.shape_cast %13 : vector<1x8x128xf32> to vector<8x128xf32>
    %15 = arith.mulf %2, %12 : vector<8x128xf32>
    %16 = arith.mulf %4, %14 : vector<8x128xf32>
    %17 = arith.addf %15, %16 : vector<8x128xf32>
    %18 = vector.broadcast %0 : f32 to vector<8x128xf32>
    %19 = arith.mulf %18, %17 : vector<8x128xf32>
    %20 = arith.mulf %2, %19 : vector<8x128xf32>
    %21 = arith.addf %20, %8 : vector<8x128xf32>
    %22 = arith.mulf %6, %12 : vector<8x128xf32>
    %23 = arith.subf %21, %22 : vector<8x128xf32>
    %24 = arith.mulf %4, %19 : vector<8x128xf32>
    %25 = arith.addf %24, %10 : vector<8x128xf32>
    %26 = arith.mulf %6, %14 : vector<8x128xf32>
    %27 = arith.subf %25, %26 : vector<8x128xf32>
    %c7 = arith.constant 7 : index
    %c0_15 = arith.constant 0 : index
    %c0_16 = arith.constant 0 : index
    %28 = vector.load %arg1[%c7, %c0_15, %c0_16] : memref<21x8x384xf32, #tpu.memory_space<vmem>>, vector<1x8x128xf32>
    %29 = vector.shape_cast %28 : vector<1x8x128xf32> to vector<8x128xf32>
    %c8 = arith.constant 8 : index
    %c0_17 = arith.constant 0 : index
    %c0_18 = arith.constant 0 : index
    %30 = vector.load %arg1[%c8, %c0_17, %c0_18] : memref<21x8x384xf32, #tpu.memory_space<vmem>>, vector<1x8x128xf32>
    %31 = vector.shape_cast %30 : vector<1x8x128xf32> to vector<8x128xf32>
    %c9 = arith.constant 9 : index
    %c0_19 = arith.constant 0 : index
    %c0_20 = arith.constant 0 : index
    %32 = vector.load %arg1[%c9, %c0_19, %c0_20] : memref<21x8x384xf32, #tpu.memory_space<vmem>>, vector<1x8x128xf32>
    %33 = vector.shape_cast %32 : vector<1x8x128xf32> to vector<8x128xf32>
    %c10 = arith.constant 10 : index
    %c0_21 = arith.constant 0 : index
    %c0_22 = arith.constant 0 : index
    %34 = vector.load %arg1[%c10, %c0_21, %c0_22] : memref<21x8x384xf32, #tpu.memory_space<vmem>>, vector<1x8x128xf32>
    %35 = vector.shape_cast %34 : vector<1x8x128xf32> to vector<8x128xf32>
    %c11 = arith.constant 11 : index
    %c0_23 = arith.constant 0 : index
    %c0_24 = arith.constant 0 : index
    %36 = vector.load %arg1[%c11, %c0_23, %c0_24] : memref<21x8x384xf32, #tpu.memory_space<vmem>>, vector<1x8x128xf32>
    %37 = vector.shape_cast %36 : vector<1x8x128xf32> to vector<8x128xf32>
    %c12 = arith.constant 12 : index
    %c0_25 = arith.constant 0 : index
    %c0_26 = arith.constant 0 : index
    %38 = vector.load %arg1[%c12, %c0_25, %c0_26] : memref<21x8x384xf32, #tpu.memory_space<vmem>>, vector<1x8x128xf32>
    %39 = vector.shape_cast %38 : vector<1x8x128xf32> to vector<8x128xf32>
    %c13 = arith.constant 13 : index
    %c0_27 = arith.constant 0 : index
    %c0_28 = arith.constant 0 : index
    %40 = vector.load %arg1[%c13, %c0_27, %c0_28] : memref<21x8x384xf32, #tpu.memory_space<vmem>>, vector<1x8x128xf32>
    %41 = vector.shape_cast %40 : vector<1x8x128xf32> to vector<8x128xf32>
    %42 = arith.mulf %29, %39 : vector<8x128xf32>
    %43 = arith.mulf %31, %41 : vector<8x128xf32>
    %44 = arith.addf %42, %43 : vector<8x128xf32>
    %45 = vector.broadcast %0 : f32 to vector<8x128xf32>
    %46 = arith.mulf %45, %44 : vector<8x128xf32>
    %47 = arith.mulf %29, %46 : vector<8x128xf32>
    %48 = arith.addf %47, %35 : vector<8x128xf32>
    %49 = arith.mulf %33, %39 : vector<8x128xf32>
    %50 = arith.subf %48, %49 : vector<8x128xf32>
    %51 = arith.mulf %31, %46 : vector<8x128xf32>
    %52 = arith.addf %51, %37 : vector<8x128xf32>
    %53 = arith.mulf %33, %41 : vector<8x128xf32>
    %54 = arith.subf %52, %53 : vector<8x128xf32>
    %55 = arith.addf %23, %50 : vector<8x128xf32>
    %56 = arith.addf %27, %54 : vector<8x128xf32>
    %57 = arith.addf %17, %44 : vector<8x128xf32>
    %c14 = arith.constant 14 : index
    %c0_29 = arith.constant 0 : index
    %c0_30 = arith.constant 0 : index
    %58 = vector.load %arg1[%c14, %c0_29, %c0_30] : memref<21x8x384xf32, #tpu.memory_space<vmem>>, vector<1x8x128xf32>
    %59 = vector.shape_cast %58 : vector<1x8x128xf32> to vector<8x128xf32>
    %c15 = arith.constant 15 : index
    %c0_31 = arith.constant 0 : index
    %c0_32 = arith.constant 0 : index
    %60 = vector.load %arg1[%c15, %c0_31, %c0_32] : memref<21x8x384xf32, #tpu.memory_space<vmem>>, vector<1x8x128xf32>
    %61 = vector.shape_cast %60 : vector<1x8x128xf32> to vector<8x128xf32>
    %c16 = arith.constant 16 : index
    %c0_33 = arith.constant 0 : index
    %c0_34 = arith.constant 0 : index
    %62 = vector.load %arg1[%c16, %c0_33, %c0_34] : memref<21x8x384xf32, #tpu.memory_space<vmem>>, vector<1x8x128xf32>
    %63 = vector.shape_cast %62 : vector<1x8x128xf32> to vector<8x128xf32>
    %c17 = arith.constant 17 : index
    %c0_35 = arith.constant 0 : index
    %c0_36 = arith.constant 0 : index
    %64 = vector.load %arg1[%c17, %c0_35, %c0_36] : memref<21x8x384xf32, #tpu.memory_space<vmem>>, vector<1x8x128xf32>
    %65 = vector.shape_cast %64 : vector<1x8x128xf32> to vector<8x128xf32>
    %c18 = arith.constant 18 : index
    %c0_37 = arith.constant 0 : index
    %c0_38 = arith.constant 0 : index
    %66 = vector.load %arg1[%c18, %c0_37, %c0_38] : memref<21x8x384xf32, #tpu.memory_space<vmem>>, vector<1x8x128xf32>
    %67 = vector.shape_cast %66 : vector<1x8x128xf32> to vector<8x128xf32>
    %c19 = arith.constant 19 : index
    %c0_39 = arith.constant 0 : index
    %c0_40 = arith.constant 0 : index
    %68 = vector.load %arg1[%c19, %c0_39, %c0_40] : memref<21x8x384xf32, #tpu.memory_space<vmem>>, vector<1x8x128xf32>
    %69 = vector.shape_cast %68 : vector<1x8x128xf32> to vector<8x128xf32>
    %c20 = arith.constant 20 : index
    %c0_41 = arith.constant 0 : index
    %c0_42 = arith.constant 0 : index
    %70 = vector.load %arg1[%c20, %c0_41, %c0_42] : memref<21x8x384xf32, #tpu.memory_space<vmem>>, vector<1x8x128xf32>
    %71 = vector.shape_cast %70 : vector<1x8x128xf32> to vector<8x128xf32>
    %72 = arith.mulf %59, %69 : vector<8x128xf32>
    %73 = arith.mulf %61, %71 : vector<8x128xf32>
    %74 = arith.addf %72, %73 : vector<8x128xf32>
    %75 = vector.broadcast %0 : f32 to vector<8x128xf32>
    %76 = arith.mulf %75, %74 : vector<8x128xf32>
    %77 = arith.mulf %59, %76 : vector<8x128xf32>
    %78 = arith.addf %77, %65 : vector<8x128xf32>
    %79 = arith.mulf %63, %69 : vector<8x128xf32>
    %80 = arith.subf %78, %79 : vector<8x128xf32>
    %81 = arith.mulf %61, %76 : vector<8x128xf32>
    %82 = arith.addf %81, %67 : vector<8x128xf32>
    %83 = arith.mulf %63, %71 : vector<8x128xf32>
    %84 = arith.subf %82, %83 : vector<8x128xf32>
    %85 = arith.addf %55, %80 : vector<8x128xf32>
    %86 = arith.addf %56, %84 : vector<8x128xf32>
    %87 = arith.addf %57, %74 : vector<8x128xf32>
    %88 = vector.shape_cast %85 : vector<8x128xf32> to vector<1x8x128xf32>
    %89 = vector.shape_cast %86 : vector<8x128xf32> to vector<1x8x128xf32>
    %90 = vector.shape_cast %87 : vector<8x128xf32> to vector<1x8x128xf32>
    %91 = tpu.concatenate %88, %89, %90 in 0 : vector<1x8x128xf32>, vector<1x8x128xf32>, vector<1x8x128xf32> -> vector<3x8x128xf32>
    %c0_43 = arith.constant 0 : index
    %c0_44 = arith.constant 0 : index
    %c0_45 = arith.constant 0 : index
    %92 = vector.load %arg3[%c0_43, %c0_44, %c0_45] : memref<3x8x384xf32, #tpu.memory_space<vmem>>, vector<3x8x128xf32>
    tpu.vector_store %arg3[%c0_43, %c0_44, %c0_45], %91 {strides = array<i32>} : memref<3x8x384xf32, #tpu.memory_space<vmem>>, vector<3x8x128xf32>,
    %c0_46 = arith.constant 0 : index
    %c0_47 = arith.constant 0 : index
    %c128 = arith.constant 128 : index
    %93 = vector.load %arg1[%c0_46, %c0_47, %c128] : memref<21x8x384xf32, #tpu.memory_space<vmem>>, vector<1x8x128xf32>
    %94 = vector.shape_cast %93 : vector<1x8x128xf32> to vector<8x128xf32>
    %c1_48 = arith.constant 1 : index
    %c0_49 = arith.constant 0 : index
    %c128_50 = arith.constant 128 : index
    %95 = vector.load %arg1[%c1_48, %c0_49, %c128_50] : memref<21x8x384xf32, #tpu.memory_space<vmem>>, vector<1x8x128xf32>
    %96 = vector.shape_cast %95 : vector<1x8x128xf32> to vector<8x128xf32>
    %c2_51 = arith.constant 2 : index
    %c0_52 = arith.constant 0 : index
    %c128_53 = arith.constant 128 : index
    %97 = vector.load %arg1[%c2_51, %c0_52, %c128_53] : memref<21x8x384xf32, #tpu.memory_space<vmem>>, vector<1x8x128xf32>
    %98 = vector.shape_cast %97 : vector<1x8x128xf32> to vector<8x128xf32>
    %c3_54 = arith.constant 3 : index
    %c0_55 = arith.constant 0 : index
    %c128_56 = arith.constant 128 : index
    %99 = vector.load %arg1[%c3_54, %c0_55, %c128_56] : memref<21x8x384xf32, #tpu.memory_space<vmem>>, vector<1x8x128xf32>
    %100 = vector.shape_cast %99 : vector<1x8x128xf32> to vector<8x128xf32>
    %c4_57 = arith.constant 4 : index
    %c0_58 = arith.constant 0 : index
    %c128_59 = arith.constant 128 : index
    %101 = vector.load %arg1[%c4_57, %c0_58, %c128_59] : memref<21x8x384xf32, #tpu.memory_space<vmem>>, vector<1x8x128xf32>
    %102 = vector.shape_cast %101 : vector<1x8x128xf32> to vector<8x128xf32>
    %c5_60 = arith.constant 5 : index
    %c0_61 = arith.constant 0 : index
    %c128_62 = arith.constant 128 : index
    %103 = vector.load %arg1[%c5_60, %c0_61, %c128_62] : memref<21x8x384xf32, #tpu.memory_space<vmem>>, vector<1x8x128xf32>
    %104 = vector.shape_cast %103 : vector<1x8x128xf32> to vector<8x128xf32>
    %c6_63 = arith.constant 6 : index
    %c0_64 = arith.constant 0 : index
    %c128_65 = arith.constant 128 : index
    %105 = vector.load %arg1[%c6_63, %c0_64, %c128_65] : memref<21x8x384xf32, #tpu.memory_space<vmem>>, vector<1x8x128xf32>
    %106 = vector.shape_cast %105 : vector<1x8x128xf32> to vector<8x128xf32>
    %107 = arith.mulf %94, %104 : vector<8x128xf32>
    %108 = arith.mulf %96, %106 : vector<8x128xf32>
    %109 = arith.addf %107, %108 : vector<8x128xf32>
    %110 = vector.broadcast %0 : f32 to vector<8x128xf32>
    %111 = arith.mulf %110, %109 : vector<8x128xf32>
    %112 = arith.mulf %94, %111 : vector<8x128xf32>
    %113 = arith.addf %112, %100 : vector<8x128xf32>
    %114 = arith.mulf %98, %104 : vector<8x128xf32>
    %115 = arith.subf %113, %114 : vector<8x128xf32>
    %116 = arith.mulf %96, %111 : vector<8x128xf32>
    %117 = arith.addf %116, %102 : vector<8x128xf32>
    %118 = arith.mulf %98, %106 : vector<8x128xf32>
    %119 = arith.subf %117, %118 : vector<8x128xf32>
    %c7_66 = arith.constant 7 : index
    %c0_67 = arith.constant 0 : index
    %c128_68 = arith.constant 128 : index
    %120 = vector.load %arg1[%c7_66, %c0_67, %c128_68] : memref<21x8x384xf32, #tpu.memory_space<vmem>>, vector<1x8x128xf32>
    %121 = vector.shape_cast %120 : vector<1x8x128xf32> to vector<8x128xf32>
    %c8_69 = arith.constant 8 : index
    %c0_70 = arith.constant 0 : index
    %c128_71 = arith.constant 128 : index
    %122 = vector.load %arg1[%c8_69, %c0_70, %c128_71] : memref<21x8x384xf32, #tpu.memory_space<vmem>>, vector<1x8x128xf32>
    %123 = vector.shape_cast %122 : vector<1x8x128xf32> to vector<8x128xf32>
    %c9_72 = arith.constant 9 : index
    %c0_73 = arith.constant 0 : index
    %c128_74 = arith.constant 128 : index
    %124 = vector.load %arg1[%c9_72, %c0_73, %c128_74] : memref<21x8x384xf32, #tpu.memory_space<vmem>>, vector<1x8x128xf32>
    %125 = vector.shape_cast %124 : vector<1x8x128xf32> to vector<8x128xf32>
    %c10_75 = arith.constant 10 : index
    %c0_76 = arith.constant 0 : index
    %c128_77 = arith.constant 128 : index
    %126 = vector.load %arg1[%c10_75, %c0_76, %c128_77] : memref<21x8x384xf32, #tpu.memory_space<vmem>>, vector<1x8x128xf32>
    %127 = vector.shape_cast %126 : vector<1x8x128xf32> to vector<8x128xf32>
    %c11_78 = arith.constant 11 : index
    %c0_79 = arith.constant 0 : index
    %c128_80 = arith.constant 128 : index
    %128 = vector.load %arg1[%c11_78, %c0_79, %c128_80] : memref<21x8x384xf32, #tpu.memory_space<vmem>>, vector<1x8x128xf32>
    %129 = vector.shape_cast %128 : vector<1x8x128xf32> to vector<8x128xf32>
    %c12_81 = arith.constant 12 : index
    %c0_82 = arith.constant 0 : index
    %c128_83 = arith.constant 128 : index
    %130 = vector.load %arg1[%c12_81, %c0_82, %c128_83] : memref<21x8x384xf32, #tpu.memory_space<vmem>>, vector<1x8x128xf32>
    %131 = vector.shape_cast %130 : vector<1x8x128xf32> to vector<8x128xf32>
    %c13_84 = arith.constant 13 : index
    %c0_85 = arith.constant 0 : index
    %c128_86 = arith.constant 128 : index
    %132 = vector.load %arg1[%c13_84, %c0_85, %c128_86] : memref<21x8x384xf32, #tpu.memory_space<vmem>>, vector<1x8x128xf32>
    %133 = vector.shape_cast %132 : vector<1x8x128xf32> to vector<8x128xf32>
    %134 = arith.mulf %121, %131 : vector<8x128xf32>
    %135 = arith.mulf %123, %133 : vector<8x128xf32>
    %136 = arith.addf %134, %135 : vector<8x128xf32>
    %137 = vector.broadcast %0 : f32 to vector<8x128xf32>
    %138 = arith.mulf %137, %136 : vector<8x128xf32>
    %139 = arith.mulf %121, %138 : vector<8x128xf32>
    %140 = arith.addf %139, %127 : vector<8x128xf32>
    %141 = arith.mulf %125, %131 : vector<8x128xf32>
    %142 = arith.subf %140, %141 : vector<8x128xf32>
    %143 = arith.mulf %123, %138 : vector<8x128xf32>
    %144 = arith.addf %143, %129 : vector<8x128xf32>
    %145 = arith.mulf %125, %133 : vector<8x128xf32>
    %146 = arith.subf %144, %145 : vector<8x128xf32>
    %147 = arith.addf %115, %142 : vector<8x128xf32>
    %148 = arith.addf %119, %146 : vector<8x128xf32>
    %149 = arith.addf %109, %136 : vector<8x128xf32>
    %c14_87 = arith.constant 14 : index
    %c0_88 = arith.constant 0 : index
    %c128_89 = arith.constant 128 : index
    %150 = vector.load %arg1[%c14_87, %c0_88, %c128_89] : memref<21x8x384xf32, #tpu.memory_space<vmem>>, vector<1x8x128xf32>
    %151 = vector.shape_cast %150 : vector<1x8x128xf32> to vector<8x128xf32>
    %c15_90 = arith.constant 15 : index
    %c0_91 = arith.constant 0 : index
    %c128_92 = arith.constant 128 : index
    %152 = vector.load %arg1[%c15_90, %c0_91, %c128_92] : memref<21x8x384xf32, #tpu.memory_space<vmem>>, vector<1x8x128xf32>
    %153 = vector.shape_cast %152 : vector<1x8x128xf32> to vector<8x128xf32>
    %c16_93 = arith.constant 16 : index
    %c0_94 = arith.constant 0 : index
    %c128_95 = arith.constant 128 : index
    %154 = vector.load %arg1[%c16_93, %c0_94, %c128_95] : memref<21x8x384xf32, #tpu.memory_space<vmem>>, vector<1x8x128xf32>
    %155 = vector.shape_cast %154 : vector<1x8x128xf32> to vector<8x128xf32>
    %c17_96 = arith.constant 17 : index
    %c0_97 = arith.constant 0 : index
    %c128_98 = arith.constant 128 : index
    %156 = vector.load %arg1[%c17_96, %c0_97, %c128_98] : memref<21x8x384xf32, #tpu.memory_space<vmem>>, vector<1x8x128xf32>
    %157 = vector.shape_cast %156 : vector<1x8x128xf32> to vector<8x128xf32>
    %c18_99 = arith.constant 18 : index
    %c0_100 = arith.constant 0 : index
    %c128_101 = arith.constant 128 : index
    %158 = vector.load %arg1[%c18_99, %c0_100, %c128_101] : memref<21x8x384xf32, #tpu.memory_space<vmem>>, vector<1x8x128xf32>
    %159 = vector.shape_cast %158 : vector<1x8x128xf32> to vector<8x128xf32>
    %c19_102 = arith.constant 19 : index
    %c0_103 = arith.constant 0 : index
    %c128_104 = arith.constant 128 : index
    %160 = vector.load %arg1[%c19_102, %c0_103, %c128_104] : memref<21x8x384xf32, #tpu.memory_space<vmem>>, vector<1x8x128xf32>
    %161 = vector.shape_cast %160 : vector<1x8x128xf32> to vector<8x128xf32>
    %c20_105 = arith.constant 20 : index
    %c0_106 = arith.constant 0 : index
    %c128_107 = arith.constant 128 : index
    %162 = vector.load %arg1[%c20_105, %c0_106, %c128_107] : memref<21x8x384xf32, #tpu.memory_space<vmem>>, vector<1x8x128xf32>
    %163 = vector.shape_cast %162 : vector<1x8x128xf32> to vector<8x128xf32>
    %164 = arith.mulf %151, %161 : vector<8x128xf32>
    %165 = arith.mulf %153, %163 : vector<8x128xf32>
    %166 = arith.addf %164, %165 : vector<8x128xf32>
    %167 = vector.broadcast %0 : f32 to vector<8x128xf32>
    %168 = arith.mulf %167, %166 : vector<8x128xf32>
    %169 = arith.mulf %151, %168 : vector<8x128xf32>
    %170 = arith.addf %169, %157 : vector<8x128xf32>
    %171 = arith.mulf %155, %161 : vector<8x128xf32>
    %172 = arith.subf %170, %171 : vector<8x128xf32>
    %173 = arith.mulf %153, %168 : vector<8x128xf32>
    %174 = arith.addf %173, %159 : vector<8x128xf32>
    %175 = arith.mulf %155, %163 : vector<8x128xf32>
    %176 = arith.subf %174, %175 : vector<8x128xf32>
    %177 = arith.addf %147, %172 : vector<8x128xf32>
    %178 = arith.addf %148, %176 : vector<8x128xf32>
    %179 = arith.addf %149, %166 : vector<8x128xf32>
    %180 = vector.shape_cast %177 : vector<8x128xf32> to vector<1x8x128xf32>
    %181 = vector.shape_cast %178 : vector<8x128xf32> to vector<1x8x128xf32>
    %182 = vector.shape_cast %179 : vector<8x128xf32> to vector<1x8x128xf32>
    %183 = tpu.concatenate %180, %181, %182 in 0 : vector<1x8x128xf32>, vector<1x8x128xf32>, vector<1x8x128xf32> -> vector<3x8x128xf32>
    %c0_108 = arith.constant 0 : index
    %c0_109 = arith.constant 0 : index
    %c128_110 = arith.constant 128 : index
    %184 = vector.load %arg3[%c0_108, %c0_109, %c128_110] : memref<3x8x384xf32, #tpu.memory_space<vmem>>, vector<3x8x128xf32>
    tpu.vector_store %arg3[%c0_108, %c0_109, %c128_110], %183 {strides = array<i32>} : memref<3x8x384xf32, #tpu.memory_space<vmem>>, vector<3x8x128xf32>,
    %c0_111 = arith.constant 0 : index
    %c0_112 = arith.constant 0 : index
    %c256 = arith.constant 256 : index
    %185 = vector.load %arg1[%c0_111, %c0_112, %c256] : memref<21x8x384xf32, #tpu.memory_space<vmem>>, vector<1x8x128xf32>
    %186 = vector.shape_cast %185 : vector<1x8x128xf32> to vector<8x128xf32>
    %c1_113 = arith.constant 1 : index
    %c0_114 = arith.constant 0 : index
    %c256_115 = arith.constant 256 : index
    %187 = vector.load %arg1[%c1_113, %c0_114, %c256_115] : memref<21x8x384xf32, #tpu.memory_space<vmem>>, vector<1x8x128xf32>
    %188 = vector.shape_cast %187 : vector<1x8x128xf32> to vector<8x128xf32>
    %c2_116 = arith.constant 2 : index
    %c0_117 = arith.constant 0 : index
    %c256_118 = arith.constant 256 : index
    %189 = vector.load %arg1[%c2_116, %c0_117, %c256_118] : memref<21x8x384xf32, #tpu.memory_space<vmem>>, vector<1x8x128xf32>
    %190 = vector.shape_cast %189 : vector<1x8x128xf32> to vector<8x128xf32>
    %c3_119 = arith.constant 3 : index
    %c0_120 = arith.constant 0 : index
    %c256_121 = arith.constant 256 : index
    %191 = vector.load %arg1[%c3_119, %c0_120, %c256_121] : memref<21x8x384xf32, #tpu.memory_space<vmem>>, vector<1x8x128xf32>
    %192 = vector.shape_cast %191 : vector<1x8x128xf32> to vector<8x128xf32>
    %c4_122 = arith.constant 4 : index
    %c0_123 = arith.constant 0 : index
    %c256_124 = arith.constant 256 : index
    %193 = vector.load %arg1[%c4_122, %c0_123, %c256_124] : memref<21x8x384xf32, #tpu.memory_space<vmem>>, vector<1x8x128xf32>
    %194 = vector.shape_cast %193 : vector<1x8x128xf32> to vector<8x128xf32>
    %c5_125 = arith.constant 5 : index
    %c0_126 = arith.constant 0 : index
    %c256_127 = arith.constant 256 : index
    %195 = vector.load %arg1[%c5_125, %c0_126, %c256_127] : memref<21x8x384xf32, #tpu.memory_space<vmem>>, vector<1x8x128xf32>
    %196 = vector.shape_cast %195 : vector<1x8x128xf32> to vector<8x128xf32>
    %c6_128 = arith.constant 6 : index
    %c0_129 = arith.constant 0 : index
    %c256_130 = arith.constant 256 : index
    %197 = vector.load %arg1[%c6_128, %c0_129, %c256_130] : memref<21x8x384xf32, #tpu.memory_space<vmem>>, vector<1x8x128xf32>
    %198 = vector.shape_cast %197 : vector<1x8x128xf32> to vector<8x128xf32>
    %199 = arith.mulf %186, %196 : vector<8x128xf32>
    %200 = arith.mulf %188, %198 : vector<8x128xf32>
    %201 = arith.addf %199, %200 : vector<8x128xf32>
    %202 = vector.broadcast %0 : f32 to vector<8x128xf32>
    %203 = arith.mulf %202, %201 : vector<8x128xf32>
    %204 = arith.mulf %186, %203 : vector<8x128xf32>
    %205 = arith.addf %204, %192 : vector<8x128xf32>
    %206 = arith.mulf %190, %196 : vector<8x128xf32>
    %207 = arith.subf %205, %206 : vector<8x128xf32>
    %208 = arith.mulf %188, %203 : vector<8x128xf32>
    %209 = arith.addf %208, %194 : vector<8x128xf32>
    %210 = arith.mulf %190, %198 : vector<8x128xf32>
    %211 = arith.subf %209, %210 : vector<8x128xf32>
    %c7_131 = arith.constant 7 : index
    %c0_132 = arith.constant 0 : index
    %c256_133 = arith.constant 256 : index
    %212 = vector.load %arg1[%c7_131, %c0_132, %c256_133] : memref<21x8x384xf32, #tpu.memory_space<vmem>>, vector<1x8x128xf32>
    %213 = vector.shape_cast %212 : vector<1x8x128xf32> to vector<8x128xf32>
    %c8_134 = arith.constant 8 : index
    %c0_135 = arith.constant 0 : index
    %c256_136 = arith.constant 256 : index
    %214 = vector.load %arg1[%c8_134, %c0_135, %c256_136] : memref<21x8x384xf32, #tpu.memory_space<vmem>>, vector<1x8x128xf32>
    %215 = vector.shape_cast %214 : vector<1x8x128xf32> to vector<8x128xf32>
    %c9_137 = arith.constant 9 : index
    %c0_138 = arith.constant 0 : index
    %c256_139 = arith.constant 256 : index
    %216 = vector.load %arg1[%c9_137, %c0_138, %c256_139] : memref<21x8x384xf32, #tpu.memory_space<vmem>>, vector<1x8x128xf32>
    %217 = vector.shape_cast %216 : vector<1x8x128xf32> to vector<8x128xf32>
    %c10_140 = arith.constant 10 : index
    %c0_141 = arith.constant 0 : index
    %c256_142 = arith.constant 256 : index
    %218 = vector.load %arg1[%c10_140, %c0_141, %c256_142] : memref<21x8x384xf32, #tpu.memory_space<vmem>>, vector<1x8x128xf32>
    %219 = vector.shape_cast %218 : vector<1x8x128xf32> to vector<8x128xf32>
    %c11_143 = arith.constant 11 : index
    %c0_144 = arith.constant 0 : index
    %c256_145 = arith.constant 256 : index
    %220 = vector.load %arg1[%c11_143, %c0_144, %c256_145] : memref<21x8x384xf32, #tpu.memory_space<vmem>>, vector<1x8x128xf32>
    %221 = vector.shape_cast %220 : vector<1x8x128xf32> to vector<8x128xf32>
    %c12_146 = arith.constant 12 : index
    %c0_147 = arith.constant 0 : index
    %c256_148 = arith.constant 256 : index
    %222 = vector.load %arg1[%c12_146, %c0_147, %c256_148] : memref<21x8x384xf32, #tpu.memory_space<vmem>>, vector<1x8x128xf32>
    %223 = vector.shape_cast %222 : vector<1x8x128xf32> to vector<8x128xf32>
    %c13_149 = arith.constant 13 : index
    %c0_150 = arith.constant 0 : index
    %c256_151 = arith.constant 256 : index
    %224 = vector.load %arg1[%c13_149, %c0_150, %c256_151] : memref<21x8x384xf32, #tpu.memory_space<vmem>>, vector<1x8x128xf32>
    %225 = vector.shape_cast %224 : vector<1x8x128xf32> to vector<8x128xf32>
    %226 = arith.mulf %213, %223 : vector<8x128xf32>
    %227 = arith.mulf %215, %225 : vector<8x128xf32>
    %228 = arith.addf %226, %227 : vector<8x128xf32>
    %229 = vector.broadcast %0 : f32 to vector<8x128xf32>
    %230 = arith.mulf %229, %228 : vector<8x128xf32>
    %231 = arith.mulf %213, %230 : vector<8x128xf32>
    %232 = arith.addf %231, %219 : vector<8x128xf32>
    %233 = arith.mulf %217, %223 : vector<8x128xf32>
    %234 = arith.subf %232, %233 : vector<8x128xf32>
    %235 = arith.mulf %215, %230 : vector<8x128xf32>
    %236 = arith.addf %235, %221 : vector<8x128xf32>
    %237 = arith.mulf %217, %225 : vector<8x128xf32>
    %238 = arith.subf %236, %237 : vector<8x128xf32>
    %239 = arith.addf %207, %234 : vector<8x128xf32>
    %240 = arith.addf %211, %238 : vector<8x128xf32>
    %241 = arith.addf %201, %228 : vector<8x128xf32>
    %c14_152 = arith.constant 14 : index
    %c0_153 = arith.constant 0 : index
    %c256_154 = arith.constant 256 : index
    %242 = vector.load %arg1[%c14_152, %c0_153, %c256_154] : memref<21x8x384xf32, #tpu.memory_space<vmem>>, vector<1x8x128xf32>
    %243 = vector.shape_cast %242 : vector<1x8x128xf32> to vector<8x128xf32>
    %c15_155 = arith.constant 15 : index
    %c0_156 = arith.constant 0 : index
    %c256_157 = arith.constant 256 : index
    %244 = vector.load %arg1[%c15_155, %c0_156, %c256_157] : memref<21x8x384xf32, #tpu.memory_space<vmem>>, vector<1x8x128xf32>
    %245 = vector.shape_cast %244 : vector<1x8x128xf32> to vector<8x128xf32>
    %c16_158 = arith.constant 16 : index
    %c0_159 = arith.constant 0 : index
    %c256_160 = arith.constant 256 : index
    %246 = vector.load %arg1[%c16_158, %c0_159, %c256_160] : memref<21x8x384xf32, #tpu.memory_space<vmem>>, vector<1x8x128xf32>
    %247 = vector.shape_cast %246 : vector<1x8x128xf32> to vector<8x128xf32>
    %c17_161 = arith.constant 17 : index
    %c0_162 = arith.constant 0 : index
    %c256_163 = arith.constant 256 : index
    %248 = vector.load %arg1[%c17_161, %c0_162, %c256_163] : memref<21x8x384xf32, #tpu.memory_space<vmem>>, vector<1x8x128xf32>
    %249 = vector.shape_cast %248 : vector<1x8x128xf32> to vector<8x128xf32>
    %c18_164 = arith.constant 18 : index
    %c0_165 = arith.constant 0 : index
    %c256_166 = arith.constant 256 : index
    %250 = vector.load %arg1[%c18_164, %c0_165, %c256_166] : memref<21x8x384xf32, #tpu.memory_space<vmem>>, vector<1x8x128xf32>
    %251 = vector.shape_cast %250 : vector<1x8x128xf32> to vector<8x128xf32>
    %c19_167 = arith.constant 19 : index
    %c0_168 = arith.constant 0 : index
    %c256_169 = arith.constant 256 : index
    %252 = vector.load %arg1[%c19_167, %c0_168, %c256_169] : memref<21x8x384xf32, #tpu.memory_space<vmem>>, vector<1x8x128xf32>
    %253 = vector.shape_cast %252 : vector<1x8x128xf32> to vector<8x128xf32>
    %c20_170 = arith.constant 20 : index
    %c0_171 = arith.constant 0 : index
    %c256_172 = arith.constant 256 : index
    %254 = vector.load %arg1[%c20_170, %c0_171, %c256_172] : memref<21x8x384xf32, #tpu.memory_space<vmem>>, vector<1x8x128xf32>
    %255 = vector.shape_cast %254 : vector<1x8x128xf32> to vector<8x128xf32>
    %256 = arith.mulf %243, %253 : vector<8x128xf32>
    %257 = arith.mulf %245, %255 : vector<8x128xf32>
    %258 = arith.addf %256, %257 : vector<8x128xf32>
    %259 = vector.broadcast %0 : f32 to vector<8x128xf32>
    %260 = arith.mulf %259, %258 : vector<8x128xf32>
    %261 = arith.mulf %243, %260 : vector<8x128xf32>
    %262 = arith.addf %261, %249 : vector<8x128xf32>
    %263 = arith.mulf %247, %253 : vector<8x128xf32>
    %264 = arith.subf %262, %263 : vector<8x128xf32>
    %265 = arith.mulf %245, %260 : vector<8x128xf32>
    %266 = arith.addf %265, %251 : vector<8x128xf32>
    %267 = arith.mulf %247, %255 : vector<8x128xf32>
    %268 = arith.subf %266, %267 : vector<8x128xf32>
    %269 = arith.addf %239, %264 : vector<8x128xf32>
    %270 = arith.addf %240, %268 : vector<8x128xf32>
    %271 = arith.addf %241, %258 : vector<8x128xf32>
    %272 = vector.shape_cast %269 : vector<8x128xf32> to vector<1x8x128xf32>
    %273 = vector.shape_cast %270 : vector<8x128xf32> to vector<1x8x128xf32>
    %274 = vector.shape_cast %271 : vector<8x128xf32> to vector<1x8x128xf32>
    %275 = tpu.concatenate %272, %273, %274 in 0 : vector<1x8x128xf32>, vector<1x8x128xf32>, vector<1x8x128xf32> -> vector<3x8x128xf32>
    %c0_173 = arith.constant 0 : index
    %c0_174 = arith.constant 0 : index
    %c256_175 = arith.constant 256 : index
    %276 = vector.load %arg3[%c0_173, %c0_174, %c256_175] : memref<3x8x384xf32, #tpu.memory_space<vmem>>, vector<3x8x128xf32>
    tpu.vector_store %arg3[%c0_173, %c0_174, %c256_175], %275 {strides = array<i32>} : memref<3x8x384xf32, #tpu.memory_space<vmem>>, vector<3x8x128xf32>,
    return
  }
  func.func @transform_0(%arg0: i32) -> (i32, i32, i32) {
    %c0_i32 = arith.constant 0 : i32
    %c0_i32_0 = arith.constant 0 : i32
    %c0_i32_1 = arith.constant 0 : i32
    return %c0_i32, %c0_i32_0, %arg0 : i32, i32, i32
  }
  func.func @transform_1(%arg0: i32) -> i32 {
    %c0_i32 = arith.constant 0 : i32
    %c0_i32_0 = arith.constant 0 : i32
    return %c0_i32 : i32
  }
  func.func @transform_2(%arg0: i32) -> (i32, i32, i32) {
    %c0_i32 = arith.constant 0 : i32
    %c0_i32_0 = arith.constant 0 : i32
    %c0_i32_1 = arith.constant 0 : i32
    return %c0_i32, %c0_i32_0, %arg0 : i32, i32, i32
  }
}

</mosaic_0001>

<bundles_post_ra>
// kernel: intergrator_forward.1
= control target key start
LH: loop header
LB: loop body
LE: loop exit
PB: predicated region body
PF: predicated region fallthrough
CT: control target
= control target key end

     0   :  { %s1059_s0 = inlined_call_operand.vmem [shape: f32[21,8,768], index: 0, kind: input, shape index: {}]   ;;  %s1060_s1 = inlined_call_operand.<no memory space> [shape: f32[1], index: 1, kind: input, shape index: {}]   ;;  %s1061_s2 = inlined_call_operand.vmem [shape: f32[3,8,768], index: 2, kind: output, shape index: {}]  }
   0x1   :  { %7 = sst [smem:[#allocation2]] %s1060_s1 }
   0x2   :  { %s744_s11 = smov 0   ;;  %s746_s12 = smov 0  }
   0x3   :  { %s748_s13 = smov 0  }
   0x4 LB: > { %s604_s1 = sadd.s32 4294967295, %s724_s13   ;;  %s761_s14 = sadd.s32 1, %s724_s13   ;;  %s724_s13 = sphi %s748_s13, %s1065_s13   ;;  %s720_s12 = sphi %s746_s12, %s1064_s12   ;;  %s716_s11 = sphi %s744_s11, %s1063_s11  }
   0x5   : > { %s17_s15 = ssub.s32 %s724_s13, %s761_s14  ;;  %s20_s16 = sadd.s32 1, %s720_s12 }
   0x6   : > { %p18_p0 = scmp.eq.s32.totalorder %s17_s15, 0  ;;  %p27_p1 = scmp.ne.s32.totalorder %s720_s12, %s716_s11 }
   0x7   : > { %p28_p2 = scmp.eq.s32.totalorder %s724_s13, 0  ;;  %p78_p3 = scmp.eq.s32.totalorder %s604_s1, 1 }
   0x8   : > { %s772_s17 = scalar_select %p18_p0, %s720_s12, %s20_s16  }
   0x9   : > { %p29_p4 = por %p28_p2, %p27_p1  ;;  %p774_p5 = por %p78_p3, %p27_p1 }
   0xa   : > { %p607_p6 = scmp.ge.s32.totalorder %s724_s13, 2 }
   0xc   : > { %103 = sbr.rel (%p607_p6) target bundleno = 56 (0x38), region = 20 }
  0x13   : > { %106 = sbr.rel (!%p29_p4) target bundleno = 56 (0x38), region = 24  ;;  %s108_s19 = sand.u32 (%p29_p4), 1, %s720_s12  }
  0x14   : > { %s673_s20 = smul.u32 (%p29_p4), 24, %s724_s13 }
  0x15   : > { %s675_s21 = smul.u32 (%p29_p4), 504, %s108_s19 }
  0x16   : > { %s784_s24 = scalar_lea.vmem (%p29_p4), %s1059_s0, %s673_s20 }
  0x17   : > { %v126_v0 = vld [vmem:[%s784_s24] sm:$0xff] (%p29_p4)  ;;  %v128_v1 = vld [vmem:[%s784_s24 + $0x8] sm:$0xff] (%p29_p4)  ;;  %v130_v2 = vld [vmem:[%s784_s24 + $0x10] sm:$0xff] (%p29_p4)  ;;  %s789_s25 = scalar_lea.vmem (%p29_p4), [#allocation3], %s675_s21 }
  0x18   : > { %127 = vst [vmem:[%s789_s25] sm:$0xff] (%p29_p4), %v126_v0  ;;  %129 = vst [vmem:[%s789_s25 + $0x8] sm:$0xff] (%p29_p4), %v128_v1  ;;  %v132_v3 = vld [vmem:[%s784_s24 + $0x30] sm:$0xff] (%p29_p4)  ;;  %v134_v4 = vld [vmem:[%s784_s24 + $0x38] sm:$0xff] (%p29_p4) }
  0x19   : > { %131 = vst [vmem:[%s789_s25 + $0x10] sm:$0xff] (%p29_p4), %v130_v2  ;;  %v136_v5 = vld [vmem:[%s784_s24 + $0x40] sm:$0xff] (%p29_p4)  ;;  %133 = vst [vmem:[%s789_s25 + $0x18] sm:$0xff] (%p29_p4), %v132_v3  ;;  %v140_v7 = vld [vmem:[%s784_s24 + $0x68] sm:$0xff] (%p29_p4) }
  0x1a   : > { %135 = vst [vmem:[%s789_s25 + $0x20] sm:$0xff] %v134_v4  ;;  %137 = vst [vmem:[%s789_s25 + $0x28] sm:$0xff] %v136_v5  ;;  %v138_v6 = vld [vmem:[%s784_s24 + $0x60] sm:$0xff]  ;;  %v142_v8 = vld [vmem:[%s784_s24 + $0x70] sm:$0xff] }
  0x1b   : > { %139 = vst [vmem:[%s789_s25 + $0x30] sm:$0xff] %v138_v6  ;;  %141 = vst [vmem:[%s789_s25 + $0x38] sm:$0xff] %v140_v7  ;;  %v144_v9 = vld [vmem:[%s784_s24 + $0x90] sm:$0xff]  ;;  %v146_v10 = vld [vmem:[%s784_s24 + $0x98] sm:$0xff] }
  0x1c   : > { %143 = vst [vmem:[%s789_s25 + $0x40] sm:$0xff] %v142_v8  ;;  %v148_v11 = vld [vmem:[%s784_s24 + $0xa0] sm:$0xff]  ;;  %145 = vst [vmem:[%s789_s25 + $0x48] sm:$0xff] %v144_v9  ;;  %v152_v13 = vld [vmem:[%s784_s24 + $0xc8] sm:$0xff] }
  0x1d   : > { %147 = vst [vmem:[%s789_s25 + $0x50] sm:$0xff] %v146_v10  ;;  %149 = vst [vmem:[%s789_s25 + $0x58] sm:$0xff] %v148_v11  ;;  %v150_v12 = vld [vmem:[%s784_s24 + $0xc0] sm:$0xff]  ;;  %v154_v14 = vld [vmem:[%s784_s24 + $0xd0] sm:$0xff] }
  0x1e   : > { %151 = vst [vmem:[%s789_s25 + $0x60] sm:$0xff] %v150_v12  ;;  %153 = vst [vmem:[%s789_s25 + $0x68] sm:$0xff] %v152_v13  ;;  %v156_v15 = vld [vmem:[%s784_s24 + $0xf0] sm:$0xff]  ;;  %v158_v16 = vld [vmem:[%s784_s24 + $0xf8] sm:$0xff] }
  0x1f   : > { %155 = vst [vmem:[%s789_s25 + $0x70] sm:$0xff] %v154_v14  ;;  %v160_v17 = vld [vmem:[%s784_s24 + $0x100] sm:$0xff]  ;;  %157 = vst [vmem:[%s789_s25 + $0x78] sm:$0xff] %v156_v15  ;;  %v164_v19 = vld [vmem:[%s784_s24 + $0x128] sm:$0xff] }
  0x20   : > { %159 = vst [vmem:[%s789_s25 + $0x80] sm:$0xff] %v158_v16  ;;  %161 = vst [vmem:[%s789_s25 + $0x88] sm:$0xff] %v160_v17  ;;  %v162_v18 = vld [vmem:[%s784_s24 + $0x120] sm:$0xff]  ;;  %v166_v20 = vld [vmem:[%s784_s24 + $0x130] sm:$0xff] }
  0x21   : > { %163 = vst [vmem:[%s789_s25 + $0x90] sm:$0xff] %v162_v18  ;;  %165 = vst [vmem:[%s789_s25 + $0x98] sm:$0xff] %v164_v19  ;;  %v168_v21 = vld [vmem:[%s784_s24 + $0x150] sm:$0xff]  ;;  %v170_v22 = vld [vmem:[%s784_s24 + $0x158] sm:$0xff] }
  0x22   : > { %167 = vst [vmem:[%s789_s25 + $0xa0] sm:$0xff] %v166_v20  ;;  %v172_v23 = vld [vmem:[%s784_s24 + $0x160] sm:$0xff]  ;;  %169 = vst [vmem:[%s789_s25 + $0xa8] sm:$0xff] %v168_v21  ;;  %v176_v25 = vld [vmem:[%s784_s24 + $0x188] sm:$0xff] }
  0x23   : > { %171 = vst [vmem:[%s789_s25 + $0xb0] sm:$0xff] %v170_v22  ;;  %173 = vst [vmem:[%s789_s25 + $0xb8] sm:$0xff] %v172_v23  ;;  %v174_v24 = vld [vmem:[%s784_s24 + $0x180] sm:$0xff]  ;;  %v178_v26 = vld [vmem:[%s784_s24 + $0x190] sm:$0xff] }
  0x24   : > { %175 = vst [vmem:[%s789_s25 + $0xc0] sm:$0xff] %v174_v24  ;;  %177 = vst [vmem:[%s789_s25 + $0xc8] sm:$0xff] %v176_v25  ;;  %v180_v27 = vld [vmem:[%s784_s24 + $0x1b0] sm:$0xff]  ;;  %v182_v28 = vld [vmem:[%s784_s24 + $0x1b8] sm:$0xff] }
  0x25   : > { %179 = vst [vmem:[%s789_s25 + $0xd0] sm:$0xff] %v178_v26  ;;  %v184_v29 = vld [vmem:[%s784_s24 + $0x1c0] sm:$0xff]  ;;  %181 = vst [vmem:[%s789_s25 + $0xd8] sm:$0xff] %v180_v27  ;;  %v188_v31 = vld [vmem:[%s784_s24 + $0x1e8] sm:$0xff] }
  0x26   : > { %183 = vst [vmem:[%s789_s25 + $0xe0] sm:$0xff] %v182_v28  ;;  %185 = vst [vmem:[%s789_s25 + $0xe8] sm:$0xff] %v184_v29  ;;  %v186_v30 = vld [vmem:[%s784_s24 + $0x1e0] sm:$0xff]  ;;  %v190_v32 = vld [vmem:[%s784_s24 + $0x1f0] sm:$0xff] }
  0x27   : > { %187 = vst [vmem:[%s789_s25 + $0xf0] sm:$0xff] %v186_v30  ;;  %189 = vst [vmem:[%s789_s25 + $0xf8] sm:$0xff] %v188_v31  ;;  %v192_v33 = vld [vmem:[%s784_s24 + $0x210] sm:$0xff]  ;;  %v194_v34 = vld [vmem:[%s784_s24 + $0x218] sm:$0xff] }
  0x28   : > { %191 = vst [vmem:[%s789_s25 + $0x100] sm:$0xff] %v190_v32  ;;  %v196_v35 = vld [vmem:[%s784_s24 + $0x220] sm:$0xff]  ;;  %193 = vst [vmem:[%s789_s25 + $0x108] sm:$0xff] %v192_v33  ;;  %v200_v37 = vld [vmem:[%s784_s24 + $0x248] sm:$0xff] }
  0x29   : > { %195 = vst [vmem:[%s789_s25 + $0x110] sm:$0xff] %v194_v34  ;;  %197 = vst [vmem:[%s789_s25 + $0x118] sm:$0xff] %v196_v35  ;;  %v198_v36 = vld [vmem:[%s784_s24 + $0x240] sm:$0xff]  ;;  %v202_v38 = vld [vmem:[%s784_s24 + $0x250] sm:$0xff] }
  0x2a   : > { %199 = vst [vmem:[%s789_s25 + $0x120] sm:$0xff] %v198_v36  ;;  %201 = vst [vmem:[%s789_s25 + $0x128] sm:$0xff] %v200_v37  ;;  %v204_v39 = vld [vmem:[%s784_s24 + $0x270] sm:$0xff]  ;;  %v206_v40 = vld [vmem:[%s784_s24 + $0x278] sm:$0xff] }
  0x2b   : > { %203 = vst [vmem:[%s789_s25 + $0x130] sm:$0xff] %v202_v38  ;;  %v208_v41 = vld [vmem:[%s784_s24 + $0x280] sm:$0xff]  ;;  %205 = vst [vmem:[%s789_s25 + $0x138] sm:$0xff] %v204_v39  ;;  %v212_v43 = vld [vmem:[%s784_s24 + $0x2a8] sm:$0xff] }
  0x2c   : > { %207 = vst [vmem:[%s789_s25 + $0x140] sm:$0xff] %v206_v40  ;;  %209 = vst [vmem:[%s789_s25 + $0x148] sm:$0xff] %v208_v41  ;;  %v210_v42 = vld [vmem:[%s784_s24 + $0x2a0] sm:$0xff]  ;;  %v214_v44 = vld [vmem:[%s784_s24 + $0x2b0] sm:$0xff] }
  0x2d   : > { %211 = vst [vmem:[%s789_s25 + $0x150] sm:$0xff] %v210_v42  ;;  %213 = vst [vmem:[%s789_s25 + $0x158] sm:$0xff] %v212_v43  ;;  %v216_v45 = vld [vmem:[%s784_s24 + $0x2d0] sm:$0xff]  ;;  %v218_v46 = vld [vmem:[%s784_s24 + $0x2d8] sm:$0xff] }
  0x2e   : > { %215 = vst [vmem:[%s789_s25 + $0x160] sm:$0xff] %v214_v44  ;;  %v220_v47 = vld [vmem:[%s784_s24 + $0x2e0] sm:$0xff]  ;;  %217 = vst [vmem:[%s789_s25 + $0x168] sm:$0xff] %v216_v45  ;;  %v224_v49 = vld [vmem:[%s784_s24 + $0x308] sm:$0xff] }
  0x2f   : > { %219 = vst [vmem:[%s789_s25 + $0x170] sm:$0xff] %v218_v46  ;;  %221 = vst [vmem:[%s789_s25 + $0x178] sm:$0xff] %v220_v47  ;;  %v222_v48 = vld [vmem:[%s784_s24 + $0x300] sm:$0xff]  ;;  %v226_v50 = vld [vmem:[%s784_s24 + $0x310] sm:$0xff] }
  0x30   : > { %223 = vst [vmem:[%s789_s25 + $0x180] sm:$0xff] %v222_v48  ;;  %225 = vst [vmem:[%s789_s25 + $0x188] sm:$0xff] %v224_v49  ;;  %v228_v51 = vld [vmem:[%s784_s24 + $0x330] sm:$0xff]  ;;  %v230_v52 = vld [vmem:[%s784_s24 + $0x338] sm:$0xff] }
  0x31   : > { %227 = vst [vmem:[%s789_s25 + $0x190] sm:$0xff] %v226_v50  ;;  %v232_v53 = vld [vmem:[%s784_s24 + $0x340] sm:$0xff]  ;;  %229 = vst [vmem:[%s789_s25 + $0x198] sm:$0xff] %v228_v51  ;;  %v236_v55 = vld [vmem:[%s784_s24 + $0x368] sm:$0xff] }
  0x32   : > { %231 = vst [vmem:[%s789_s25 + $0x1a0] sm:$0xff] %v230_v52  ;;  %233 = vst [vmem:[%s789_s25 + $0x1a8] sm:$0xff] %v232_v53  ;;  %v234_v54 = vld [vmem:[%s784_s24 + $0x360] sm:$0xff]  ;;  %v238_v56 = vld [vmem:[%s784_s24 + $0x370] sm:$0xff] }
  0x33   : > { %235 = vst [vmem:[%s789_s25 + $0x1b0] sm:$0xff] %v234_v54  ;;  %237 = vst [vmem:[%s789_s25 + $0x1b8] sm:$0xff] %v236_v55  ;;  %v240_v57 = vld [vmem:[%s784_s24 + $0x390] sm:$0xff]  ;;  %v242_v58 = vld [vmem:[%s784_s24 + $0x398] sm:$0xff] }
  0x34   : > { %239 = vst [vmem:[%s789_s25 + $0x1c0] sm:$0xff] %v238_v56  ;;  %v244_v59 = vld [vmem:[%s784_s24 + $0x3a0] sm:$0xff]  ;;  %241 = vst [vmem:[%s789_s25 + $0x1c8] sm:$0xff] %v240_v57  ;;  %v248_v61 = vld [vmem:[%s784_s24 + $0x3c8] sm:$0xff] }
  0x35   : > { %243 = vst [vmem:[%s789_s25 + $0x1d0] sm:$0xff] %v242_v58  ;;  %245 = vst [vmem:[%s789_s25 + $0x1d8] sm:$0xff] %v244_v59  ;;  %v246_v60 = vld [vmem:[%s784_s24 + $0x3c0] sm:$0xff]  ;;  %v250_v62 = vld [vmem:[%s784_s24 + $0x3d0] sm:$0xff] }
  0x36   : > { %247 = vst [vmem:[%s789_s25 + $0x1e0] sm:$0xff] %v246_v60  ;;  %249 = vst [vmem:[%s789_s25 + $0x1e8] sm:$0xff] %v248_v61 }
  0x37   : > { %251 = vst [vmem:[%s789_s25 + $0x1f0] sm:$0xff] %v250_v62 }
  0x38 PF: > { %p609_p7 = scmp.ge.s32.totalorder %s724_s13, 1  ;;  %p256_p8 = scmp.lt.s32.totalorder %s724_s13, 3 }
  0x3a   : > { %p257_p9 = pnand %p609_p7, %p256_p8 }
  0x3b   : > { %s263_s26 = sand.u32 (!%p257_p9), 1, %s716_s11   ;;  %s285_s27 = sld [smem:[#allocation2]] (!%p257_p9) }
  0x3c   : > { %260 = sbr.rel (%p257_p9) target bundleno = 114 (0x72), region = 47 }
  0x3d   : > { %s676_s28 = smul.u32 (!%p257_p9), 504, %s263_s26 }
  0x3e   : > { %s940_s30 = smul.u32 (!%p257_p9), 72, %s263_s26 }
  0x3f   : > { %s917_s29 = scalar_lea.vmem (!%p257_p9), [#allocation3], %s676_s28 }
  0x40   : > { %v286_v63 = vld [vmem:[%s917_s29] sm:$0xff] (!%p257_p9)  ;;  %v610_v0 = vld [vmem:[%s917_s29 + $0x18] sm:$0xff] (!%p257_p9)  ;;  %v615_v2 = vld [vmem:[%s917_s29 + $0x90] sm:$0xff] (!%p257_p9)  ;;  %s978_s3 = scalar_lea.vmem (!%p257_p9), [#allocation4], %s940_s30 }
  0x41   : > { %v614_v1 = vld [vmem:[%s917_s29 + $0x78] sm:$0xff] (!%p257_p9)  ;;  %v611_v3 = vld [vmem:[%s917_s29 + $0x30] sm:$0xff] (!%p257_p9)  ;;  %v300_v5 = vmul.f32 (!%p257_p9), %v615_v2, %v610_v0  ;;  %v616_v6 = vld [vmem:[%s917_s29 + $0xa8] sm:$0xff] (!%p257_p9)  ;;  %v926_v8 = vstv (!%p257_p9), %s285_s27 }
  0x42   : > { %v299_v4 = vmul.f32 (!%p257_p9), %v614_v1, %v286_v63  ;;  %v617_v7 = vld [vmem:[%s917_s29 + $0xc0] sm:$0xff] (!%p257_p9)  ;;  %v618_v9 = vld [vmem:[%s917_s29 + $0xd8] sm:$0xff] (!%p257_p9)  ;;  %v623_v15 = vld [vmem:[%s917_s29 + $0x150] sm:$0xff] (!%p257_p9)  ;;  %v934_v18 = vmul.f32 (!%p257_p9), %v614_v1, %v611_v3  ;;  %v938_v21 = vmul.f32 (!%p257_p9), %v615_v2, %v611_v3 }
  0x43   : > { %v621_v10 = vld [vmem:[%s917_s29 + $0x120] sm:$0xff]  ;;  %v622_v11 = vld [vmem:[%s917_s29 + $0x138] sm:$0xff]  ;;  %v624_v16 = vld [vmem:[%s917_s29 + $0x168] sm:$0xff]  ;;  %s674_s4 = smul.u32 (%p774_p5), 24, %s604_s1 }
  0x44   : > { %v301_v12 = vadd.f32 %v300_v5, %v299_v4  ;;  %v326_v13 = vmul.f32 %v621_v10, %v616_v6  ;;  %v327_v14 = vmul.f32 %v622_v11, %v617_v7  ;;  %v625_v17 = vld [vmem:[%s917_s29 + $0x180] sm:$0xff]  ;;  %v628_v19 = vld [vmem:[%s917_s29 + $0x1c8] sm:$0xff]  ;;  %v332_v28 = vmul.f32 %v621_v10, %v618_v9  ;;  %v954_v34 = vld [vmem:[%s917_s29 + $0x38] sm:$0xff] }
  0x45   : > { %v629_v20 = vld [vmem:[%s917_s29 + $0x1e0] sm:$0xff]  ;;  %v612_v22 = vld [vmem:[%s917_s29 + $0x48] sm:$0xff]  ;;  %v355_v25 = vmul.f32 %v628_v19, %v623_v15  ;;  %v945_v29 = vmul.f32 %v628_v19, %v625_v17  ;;  %v336_v30 = vmul.f32 %v622_v11, %v618_v9  ;;  %v635_v40 = vld [vmem:[%s917_s29 + $0x98] sm:$0xff]  ;;  %s514_s7 = scalar_lea.vmem (%p774_p5), %s1061_s2, %s674_s4 }
  0x46   : > { %v303_v23 = vmul.f32 %v926_v8, %v301_v12  ;;  %v328_v24 = vadd.f32 %v327_v14, %v326_v13  ;;  %v356_v26 = vmul.f32 %v629_v20, %v624_v16  ;;  %v613_v27 = vld [vmem:[%s917_s29 + $0x60] sm:$0xff]  ;;  %v947_v31 = vmul.f32 %v629_v20, %v625_v17  ;;  %v373_v32 = vld [vmem:[%s917_s29 + $0x8] sm:$0xff]  ;;  %v619_v41 = vld [vmem:[%s917_s29 + $0xf0] sm:$0xff] }
  0x47   : > { %v951_v33 = vld [vmem:[%s917_s29 + $0x20] sm:$0xff]  ;;  %v620_v42 = vld [vmem:[%s917_s29 + $0x108] sm:$0xff]  ;;  %v636_v47 = vld [vmem:[%s917_s29 + $0xb0] sm:$0xff] }
  0x48   : > { %v304_v35 = vmul.f32 %v303_v23, %v286_v63  ;;  %v329_v36 = vmul.f32 %v328_v24, %v926_v8  ;;  %v357_v37 = vadd.f32 %v356_v26, %v355_v25  ;;  %v308_v38 = vmul.f32 %v610_v0, %v303_v23  ;;  %v634_v39 = vld [vmem:[%s917_s29 + $0x80] sm:$0xff]  ;;  %v637_v52 = vld [vmem:[%s917_s29 + $0xc8] sm:$0xff]  ;;  %v626_v55 = vld [vmem:[%s917_s29 + $0x198] sm:$0xff] }
  0x49   : > { %v340_v43 = vadd.f32 %v328_v24, %v301_v12  ;;  %v380_v44 = vmul.f32 %v634_v39, %v373_v32  ;;  %v381_v45 = vmul.f32 %v635_v40, %v951_v33  ;;  %v963_v46 = vmul.f32 %v634_v39, %v954_v34  ;;  %v641_v53 = vld [vmem:[%s917_s29 + $0x128] sm:$0xff]  ;;  %v642_v54 = vld [vmem:[%s917_s29 + $0x140] sm:$0xff]  ;;  %v643_v61 = vld [vmem:[%s917_s29 + $0x158] sm:$0xff] }
  0x4a   : > { %v305_v48 = vadd.f32 %v612_v22, %v304_v35  ;;  %v330_v49 = vmul.f32 %v616_v6, %v329_v36  ;;  %v358_v50 = vmul.f32 %v357_v37, %v926_v8  ;;  %v309_v51 = vadd.f32 %v613_v27, %v308_v38  ;;  %v638_v59 = vld [vmem:[%s917_s29 + $0xe0] sm:$0xff]  ;;  %v627_v2 = vld [vmem:[%s917_s29 + $0x1b0] sm:$0xff]  ;;  %v645_v10 = vld [vmem:[%s917_s29 + $0x188] sm:$0xff] }
  0x4b   : > { %v334_v56 = vmul.f32 %v617_v7, %v329_v36  ;;  %v369_v57 = vadd.f32 %v357_v37, %v340_v43  ;;  %v382_v58 = vadd.f32 %v381_v45, %v380_v44  ;;  %v399_v60 = vmul.f32 %v641_v53, %v636_v47  ;;  %v648_v3 = vld [vmem:[%s917_s29 + $0x1d0] sm:$0xff]  ;;  %v649_v11 = vld [vmem:[%s917_s29 + $0x1e8] sm:$0xff] }
  0x4c   : > { %v307_v62 = vsub.f32 %v305_v48, %v934_v18  ;;  %v331_v63 = vadd.f32 %v619_v41, %v330_v49  ;;  %v359_v0 = vmul.f32 %v623_v15, %v358_v50  ;;  %v311_v1 = vsub.f32 %v309_v51, %v938_v21  ;;  %v644_v9 = vld [vmem:[%s917_s29 + $0x170] sm:$0xff]  ;;  %v654_v41 = vld [vmem:[%s917_s29 + $0x88] sm:$0xff]  ;;  %v655_v48 = vld [vmem:[%s917_s29 + $0xa0] sm:$0xff] }
  0x4d   : > { %v335_v4 = vadd.f32 %v620_v42, %v334_v56  ;;  %v363_v5 = vmul.f32 %v624_v16, %v358_v50  ;;  %372 = vst [vmem:[%s978_s3 + $0x30] sm:$0xff] %v369_v57  ;;  %v383_v6 = vmul.f32 %v382_v58, %v926_v8  ;;  %v400_v7 = vmul.f32 %v642_v54, %v637_v52  ;;  %v632_v14 = vld [vmem:[%s917_s29 + $0x50] sm:$0xff]  ;;  %v650_v45 = vld [vmem:[%s917_s29 + $0x28] sm:$0xff]  ;;  %v646_v49 = vld [vmem:[%s917_s29 + $0x1a0] sm:$0xff] }
  0x4e   : > { %v333_v12 = vsub.f32 %v331_v63, %v332_v28  ;;  %v360_v13 = vadd.f32 %v626_v55, %v359_v0  ;;  %v405_v15 = vmul.f32 %v641_v53, %v638_v59  ;;  %v421_v17 = vmul.f32 %v648_v3, %v643_v61  ;;  %v639_v28 = vld [vmem:[%s917_s29 + $0xf8] sm:$0xff]  ;;  %v640_v38 = vld [vmem:[%s917_s29 + $0x110] sm:$0xff] }
  0x4f   : > { %v337_v18 = vsub.f32 %v335_v4, %v336_v30  ;;  %v364_v19 = vadd.f32 %v627_v2, %v363_v5  ;;  %v384_v16 = vmul.f32 %v383_v6, %v373_v32  ;;  %v401_v20 = vadd.f32 %v400_v7, %v399_v60  ;;  %v633_v32 = vld [vmem:[%s917_s29 + $0x68] sm:$0xff]  ;;  %v439_v39 = vld [vmem:[%s917_s29 + $0x10] sm:$0xff]  ;;  %v656_v55 = vld [vmem:[%s917_s29 + $0xb8] sm:$0xff] }
  0x50   : > { %v338_v21 = vadd.f32 %v333_v12, %v307_v62  ;;  %v362_v22 = vsub.f32 %v360_v13, %v945_v29  ;;  %v422_v23 = vmul.f32 %v649_v11, %v644_v9  ;;  %v987_v24 = vmul.f32 %v648_v3, %v645_v10  ;;  %v661_v56 = vld [vmem:[%s917_s29 + $0x130] sm:$0xff]  ;;  %v663_v3 = vld [vmem:[%s917_s29 + $0x160] sm:$0xff]  ;;  %v668_v4 = vld [vmem:[%s917_s29 + $0x1d8] sm:$0xff] }
  0x51   : > { %v339_v25 = vadd.f32 %v337_v18, %v311_v1  ;;  %v366_v26 = vsub.f32 %v364_v19, %v947_v31  ;;  %v385_v27 = vadd.f32 %v632_v14, %v384_v16  ;;  %v402_v30 = vmul.f32 %v401_v20, %v926_v8  ;;  %v657_v0 = vld [vmem:[%s917_s29 + $0xd0] sm:$0xff]  ;;  %v658_v18 = vld [vmem:[%s917_s29 + $0xe8] sm:$0xff]  ;;  %v652_v16 = vld [vmem:[%s917_s29 + $0x58] sm:$0xff] }
  0x52   : > { %v367_v35 = vadd.f32 %v362_v22, %v338_v21  ;;  %v423_v36 = vadd.f32 %v422_v23, %v421_v17  ;;  %v388_v37 = vmul.f32 %v951_v33, %v383_v6  ;;  %v390_v29 = vmul.f32 %v635_v40, %v954_v34  ;;  %v651_v6 = vld [vmem:[%s917_s29 + $0x40] sm:$0xff]  ;;  %v665_v22 = vld [vmem:[%s917_s29 + $0x190] sm:$0xff] }
  0x53   : > { %v368_v31 = vadd.f32 %v366_v26, %v339_v25  ;;  %v387_v42 = vsub.f32 %v385_v27, %v963_v46  ;;  %v403_v43 = vmul.f32 %v636_v47, %v402_v30  ;;  %v407_v44 = vmul.f32 %v637_v52, %v402_v30  ;;  %v647_v46 = vld [vmem:[%s917_s29 + $0x1b8] sm:$0xff]  ;;  %v653_v25 = vld [vmem:[%s917_s29 + $0x70] sm:$0xff] }
  0x54   : > { %370 = vst [vmem:[%s978_s3] sm:$0xff] %v367_v35  ;;  %v424_v33 = vmul.f32 %v423_v36, %v926_v8  ;;  %v389_v34 = vadd.f32 %v633_v32, %v388_v37  ;;  %v409_v40 = vmul.f32 %v642_v54, %v638_v59  ;;  %v431_v50 = vmul.f32 %v649_v11, %v645_v10  ;;  %v662_v54 = vld [vmem:[%s917_s29 + $0x148] sm:$0xff]  ;;  %v664_v10 = vld [vmem:[%s917_s29 + $0x178] sm:$0xff] }
  0x55   : > { %371 = vst [vmem:[%s978_s3 + $0x18] sm:$0xff] %v368_v31  ;;  %v404_v51 = vadd.f32 %v639_v28, %v403_v43  ;;  %v408_v53 = vadd.f32 %v640_v38, %v407_v44  ;;  %v413_v47 = vadd.f32 %v401_v20, %v382_v58  ;;  %v446_v52 = vmul.f32 %v654_v41, %v439_v39  ;;  %v660_v31 = vld [vmem:[%s917_s29 + $0x118] sm:$0xff] }
  0x56   : > { %v425_v57 = vmul.f32 %v643_v61, %v424_v33  ;;  %v391_v60 = vsub.f32 %v389_v34, %v390_v29  ;;  %v429_v62 = vmul.f32 %v644_v9, %v424_v33  ;;  %v447_v63 = vmul.f32 %v655_v48, %v650_v45  ;;  %v669_v9 = vld [vmem:[%s917_s29 + $0x1f0] sm:$0xff]  ;;  %v659_v29 = vld [vmem:[%s917_s29 + $0x100] sm:$0xff] }
  0x57   : > { %v406_v59 = vsub.f32 %v404_v51, %v405_v15  ;;  %v410_v1 = vsub.f32 %v408_v53, %v409_v40  ;;  %v435_v2 = vadd.f32 %v423_v36, %v413_v47  ;;  %v465_v61 = vmul.f32 %v661_v56, %v656_v55  ;;  %v667_v34 = vld [vmem:[%s917_s29 + $0x1c0] sm:$0xff] }
  0x58   : > { %v426_v58 = vadd.f32 %v646_v49, %v425_v57  ;;  %v430_v5 = vadd.f32 %v647_v46, %v429_v62  ;;  %v448_v7 = vadd.f32 %v447_v63, %v446_v52  ;;  %v466_v13 = vmul.f32 %v662_v54, %v657_v0  ;;  %v666_v49 = vld [vmem:[%s917_s29 + $0x1a8] sm:$0xff] }
  0x59   : > { %v411_v11 = vadd.f32 %v406_v59, %v387_v42  ;;  %v412_v12 = vadd.f32 %v410_v1, %v391_v60  ;;  %438 = vst [vmem:[%s978_s3 + $0x38] sm:$0xff] %v435_v2  ;;  %v487_v19 = vmul.f32 %v668_v4, %v663_v3  ;;  %v452_v20 = vmul.f32 %v654_v41, %v651_v6 }
  0x5a   : > { %v428_v14 = vsub.f32 %v426_v58, %v987_v24  ;;  %v432_v15 = vsub.f32 %v430_v5, %v431_v50  ;;  %v449_v17 = vmul.f32 %v448_v7, %v926_v8  ;;  %v467_v21 = vadd.f32 %v466_v13, %v465_v61  ;;  %v539_v5 = vld [vmem:[%s978_s3 + $0x30] sm:$0xff] (%p774_p5) }
  0x5b   : > { %v488_v23 = vmul.f32 %v669_v9, %v664_v10  ;;  %v456_v26 = vmul.f32 %v655_v48, %v651_v6  ;;  %v471_v35 = vmul.f32 %v661_v56, %v658_v18  ;;  %v493_v38 = vmul.f32 %v668_v4, %v665_v22  ;;  %v527_v59 = vld [vmem:[%s978_s3] sm:$0xff] (%p774_p5)  ;;  %540 = vst [vmem:[%s514_s7 + $0x60] sm:$0xff] (%p774_p5), %v539_v5 }
  0x5c   : > { %v433_v27 = vadd.f32 %v428_v14, %v411_v11  ;;  %v434_v28 = vadd.f32 %v432_v15, %v412_v12  ;;  %v450_v30 = vmul.f32 %v449_v17, %v439_v39  ;;  %v454_v24 = vmul.f32 %v650_v45, %v449_v17  ;;  %528 = vst [vmem:[%s514_s7] sm:$0xff] (%p774_p5), %v527_v59 }
  0x5d   : > { %v468_v32 = vmul.f32 %v467_v21, %v926_v8  ;;  %v489_v36 = vadd.f32 %v488_v23, %v487_v19  ;;  %v479_v42 = vadd.f32 %v467_v21, %v448_v7  ;;  %v475_v45 = vmul.f32 %v662_v54, %v658_v18 }
  0x5e   : > { %436 = vst [vmem:[%s978_s3 + $0x8] sm:$0xff] %v433_v27  ;;  %437 = vst [vmem:[%s978_s3 + $0x20] sm:$0xff] %v434_v28  ;;  %v451_v37 = vadd.f32 %v652_v16, %v450_v30  ;;  %v455_v41 = vadd.f32 %v653_v25, %v454_v24  ;;  %v497_v40 = vmul.f32 %v669_v9, %v665_v22 }
  0x5f   : > { %v469_v43 = vmul.f32 %v656_v55, %v468_v32  ;;  %v490_v44 = vmul.f32 %v489_v36, %v926_v8  ;;  %v473_v39 = vmul.f32 %v657_v0, %v468_v32  ;;  %v501_v50 = vadd.f32 %v489_v36, %v479_v42 }
  0x60   : > { %v453_v48 = vsub.f32 %v451_v37, %v452_v20  ;;  %v457_v33 = vsub.f32 %v455_v41, %v456_v26  ;;  %v541_v6 = vld [vmem:[%s978_s3 + $0x38] sm:$0xff] (%p774_p5) }
  0x61   : > { %v470_v51 = vadd.f32 %v659_v29, %v469_v43  ;;  %v491_v53 = vmul.f32 %v663_v3, %v490_v44  ;;  %v474_v46 = vadd.f32 %v660_v31, %v473_v39  ;;  %v495_v47 = vmul.f32 %v664_v10, %v490_v44  ;;  %504 = vst [vmem:[%s978_s3 + $0x40] sm:$0xff] %v501_v50  ;;  %v533_v3 = vld [vmem:[%s978_s3 + $0x18] sm:$0xff] (%p774_p5) }
  0x62   : > { %534 = vst [vmem:[%s514_s7 + $0x30] sm:$0xff] (%p774_p5), %v533_v3  ;;  %542 = vst [vmem:[%s514_s7 + $0x68] sm:$0xff] (%p774_p5), %v541_v6 }
  0x63   : > { %v472_v52 = vsub.f32 %v470_v51, %v471_v35  ;;  %v492_v56 = vadd.f32 %v666_v49, %v491_v53  ;;  %v476_v55 = vsub.f32 %v474_v46, %v475_v45  ;;  %v496_v57 = vadd.f32 %v667_v34, %v495_v47  ;;  %511 = sbr.rel (!%p774_p5) target bundleno = 114 (0x72), region = 55 }
  0x65   : > { %v477_v8 = vadd.f32 %v472_v52, %v453_v48  ;;  %v494_v60 = vsub.f32 %v492_v56, %v493_v38  ;;  %v478_v62 = vadd.f32 %v476_v55, %v457_v33  ;;  %v498_v63 = vsub.f32 %v496_v57, %v497_v40  ;;  %v529_v1 = vld [vmem:[%s978_s3 + $0x8] sm:$0xff] (%p774_p5)  ;;  %v535_v4 = vld [vmem:[%s978_s3 + $0x20] sm:$0xff] (%p774_p5) }
  0x66   : > { %530 = vst [vmem:[%s514_s7 + $0x8] sm:$0xff] (%p774_p5), %v529_v1  ;;  %536 = vst [vmem:[%s514_s7 + $0x38] sm:$0xff] (%p774_p5), %v535_v4 }
  0x67   : > { %v499_v0 = vadd.f32 %v494_v60, %v477_v8  ;;  %v500_v54 = vadd.f32 %v498_v63, %v478_v62 }
  0x68   : > { %v543_v7 = vld [vmem:[%s978_s3 + $0x40] sm:$0xff] (%p774_p5) }
  0x69   : > { %502 = vst [vmem:[%s978_s3 + $0x10] sm:$0xff] %v499_v0  ;;  %503 = vst [vmem:[%s978_s3 + $0x28] sm:$0xff] %v500_v54 }
  0x6a   : > { %544 = vst [vmem:[%s514_s7 + $0x70] sm:$0xff] %v543_v7 }
  0x70   : > { %v531_v2 = vld [vmem:[%s978_s3 + $0x10] sm:$0xff]  ;;  %v537_v58 = vld [vmem:[%s978_s3 + $0x28] sm:$0xff] }
  0x71   : > { %532 = vst [vmem:[%s514_s7 + $0x10] sm:$0xff] %v531_v2  ;;  %538 = vst [vmem:[%s514_s7 + $0x40] sm:$0xff] %v537_v58 }
  0x72 PF: > { %p10_p10 = scmp.ge.s32.totalorder %s761_s14, 4   ;;  %s1063_s11 = smov %s720_s12 }
  0x73   : > { %s1064_s12 = smov %s772_s17  ;;  %s1065_s13 = smov %s761_s14 }
  0x74   :  { %12 = sbr.rel (!%p10_p10) target bundleno = 4 (0x4), region = 129 }

</bundles_post_ra>
